<compile_context>
chip_gen: v6e
topology: v6e:2x2x1
jax: 0.10.0
libtpu: 0.0.40
codegen_flags: <defaults>
</compile_context>

<pallas_src>
import jax
import jax.numpy as jnp
import numpy as np
from jax import lax
from jax.experimental import pallas as pl
from jax.experimental.pallas import tpu as pltpu


def basic_block_kernel(x_ref, w1_ref, s1_ref, b1_ref,
                       w2_ref, s2_ref, b2_ref, o_ref):
    # x_ref : (1, H+2, W*C)   input, zero-padded one row top/bottom (H halo);
    #                         the W halo is folded into the banded weights.
    # w*_ref: (3*W*C, W*C)    block-banded im2col conv weights.
    # s*/b* : (1, W*C)        folded BN scale / bias, tiled across W.
    # o_ref : (1, H, W*C)
    H = o_ref.shape[1]
    WC = o_ref.shape[2]

    xp = x_ref[0]                                               # (H+2, WC)

    # ---- conv1 (3x3, pad=1, stride=1): single deep matmul, K = 3*W*C ----
    patch1 = jnp.concatenate(
        [xp[0:H, :], xp[1:H + 1, :], xp[2:H + 2, :]], axis=1)   # (H, 3*WC)
    acc1 = jnp.dot(patch1, w1_ref[...], preferred_element_type=jnp.float32)

    # ---- bn1 + relu1 ----
    out1 = jnp.maximum(acc1 * s1_ref[...] + b1_ref[...], 0.0)   # (H, WC)

    # ---- conv2: build the H halo in registers (no VMEM scratch round trip) --
    zrow = jnp.zeros((1, WC), jnp.float32)
    rowm1 = jnp.concatenate([zrow, out1[:H - 1, :]], axis=0)    # out1[h-1]
    rowp1 = jnp.concatenate([out1[1:H, :], zrow], axis=0)       # out1[h+1]
    patch2 = jnp.concatenate([rowm1, out1, rowp1], axis=1)      # (H, 3*WC)
    acc2 = jnp.dot(patch2, w2_ref[...], preferred_element_type=jnp.float32)

    # ---- bn2 + residual add + relu2 ----
    out2 = acc2 * s2_ref[...] + b2_ref[...]
    identity = xp[1:H + 1, :]           # stride=1, Cin == Cout, no downsample
    o_ref[0] = jnp.maximum(out2 + identity, 0.0).astype(o_ref.dtype)


@jax.jit
def basic_block_forward(x_hpad, w1_band, s1, b1, w2_band, s2, b2):
    B, Hp2, WC = x_hpad.shape
    H = Hp2 - 2
    K = w1_band.shape[0]

    grid_spec = pltpu.PrefetchScalarGridSpec(
        num_scalar_prefetch=0,
        grid=(B,),
        in_specs=[
            pl.BlockSpec((1, Hp2, WC), lambda b: (b, 0, 0)),
            pl.BlockSpec((K, WC), lambda b: (0, 0)),
            pl.BlockSpec((1, WC), lambda b: (0, 0)),
            pl.BlockSpec((1, WC), lambda b: (0, 0)),
            pl.BlockSpec((K, WC), lambda b: (0, 0)),
            pl.BlockSpec((1, WC), lambda b: (0, 0)),
            pl.BlockSpec((1, WC), lambda b: (0, 0)),
        ],
        out_specs=pl.BlockSpec((1, H, WC), lambda b: (b, 0, 0)),
    )

    return pl.pallas_call(
        basic_block_kernel,
        out_shape=jax.ShapeDtypeStruct((B, H, WC), x_hpad.dtype),
        grid_spec=grid_spec,
        compiler_params=pltpu.CompilerParams(
            dimension_semantics=("parallel",)),
    )(x_hpad, w1_band, s1, b1, w2_band, s2, b2)


# ----------------------------- host-side glue -------------------------------

def _fold_bn(gamma, beta, mean, var, eps=1e-5):
    scale = gamma / np.sqrt(var + eps)
    bias = beta - mean * scale
    return scale, bias


def _band_weights(w_oihw, W):
    """OIHW conv weight -> (3*W*Cin, W*Cout) block-banded im2col matrix.

    Entry [kh*W*Cin + w_in*Cin + ci, w_out*Cout + co] = w[co, ci, kh, kw] with
    kw = w_in - w_out + 1 (zero outside the band), which folds the SAME
    padding along W into the matmul.
    """
    Cout, Cin, KH, KW = w_oihw.shape
    w_t = np.transpose(np.asarray(w_oihw), (2, 3, 1, 0))    # (kh, kw, ci, co)
    band = np.zeros((KH, W, Cin, W, Cout), np.float32)
    for kw in range(KW):
        for w_out in range(W):
            w_in = w_out + kw - 1
            if 0 <= w_in < W:
                band[:, w_in, :, w_out, :] = w_t[:, kw, :, :]
    return band.reshape(KH * W * Cin, W * Cout)


def _ref_block(x_nhwc, w1_hwio, s1, b1, w2_hwio, s2, b2):
    dn = ("NHWC", "HWIO", "NHWC")
    y = lax.conv_general_dilated(x_nhwc, w1_hwio, (1, 1), "SAME",
                                 dimension_numbers=dn)
    y = jnp.maximum(y * s1.reshape(1, 1, 1, -1) + b1.reshape(1, 1, 1, -1), 0.0)
    y = lax.conv_general_dilated(y, w2_hwio, (1, 1), "SAME",
                                 dimension_numbers=dn)
    y = y * s2.reshape(1, 1, 1, -1) + b2.reshape(1, 1, 1, -1)
    return jnp.maximum(y + x_nhwc, 0.0)


if __name__ == "__main__":
    # BasicBlock(in_channel=8, block_channel=8, stride=1, downsample=None)
    B, C, H, W = 2, 8, 16, 16          # W * C = 128 -> exactly one lane group
    key = jax.random.PRNGKey(0)
    (kx, kw1, kw2, kg1, kb1, km1, kv1,
     kg2, kb2, km2, kv2) = jax.random.split(key, 11)

    # PyTorch-layout input (NCHW) and conv weights (OIHW), deterministic init.
    x_nchw = jax.random.normal(kx, (B, C, H, W), jnp.float32)
    w1_oihw = jax.random.normal(kw1, (C, C, 3, 3), jnp.float32) * 0.1
    w2_oihw = jax.random.normal(kw2, (C, C, 3, 3), jnp.float32) * 0.1

    gamma1 = 1.0 + 0.1 * jax.random.normal(kg1, (C,), jnp.float32)
    beta1 = 0.1 * jax.random.normal(kb1, (C,), jnp.float32)
    mean1 = 0.1 * jax.random.normal(km1, (C,), jnp.float32)
    var1 = 1.0 + 0.1 * jax.random.uniform(kv1, (C,), jnp.float32)

    gamma2 = 1.0 + 0.1 * jax.random.normal(kg2, (C,), jnp.float32)
    beta2 = 0.1 * jax.random.normal(kb2, (C,), jnp.float32)
    mean2 = 0.1 * jax.random.normal(km2, (C,), jnp.float32)
    var2 = 1.0 + 0.1 * jax.random.uniform(kv2, (C,), jnp.float32)

    # Fold BN into per-channel scale/bias, tile across W for the (w, c) lanes.
    s1, b1 = _fold_bn(np.asarray(gamma1), np.asarray(beta1),
                      np.asarray(mean1), np.asarray(var1))
    s2, b2 = _fold_bn(np.asarray(gamma2), np.asarray(beta2),
                      np.asarray(mean2), np.asarray(var2))
    s1_wc = jnp.asarray(np.tile(s1, W).reshape(1, W * C))
    b1_wc = jnp.asarray(np.tile(b1, W).reshape(1, W * C))
    s2_wc = jnp.asarray(np.tile(s2, W).reshape(1, W * C))
    b2_wc = jnp.asarray(np.tile(b2, W).reshape(1, W * C))

    # Banded im2col weights (host-side, once).
    w1_band = jnp.asarray(_band_weights(w1_oihw, W))
    w2_band = jnp.asarray(_band_weights(w2_oihw, W))

    # NCHW -> NHWC -> (B, H, W*C), pad H only (single input stream).
    x_nhwc = jnp.transpose(x_nchw, (0, 2, 3, 1))
    x_hwc = x_nhwc.reshape(B, H, W * C)
    x_hpad = jnp.pad(x_hwc, ((0, 0), (1, 1), (0, 0)))

    out = basic_block_forward(x_hpad, w1_band, s1_wc, b1_wc,
                              w2_band, s2_wc, b2_wc)
    out = jax.block_until_ready(out)
    out_nhwc = np.asarray(out).reshape(B, H, W, C)

    ref = _ref_block(x_nhwc,
                     jnp.transpose(w1_oihw, (2, 3, 1, 0)),
                     jnp.asarray(s1), jnp.asarray(b1),
                     jnp.transpose(w2_oihw, (2, 3, 1, 0)),
                     jnp.asarray(s2), jnp.asarray(b2))
    np.testing.assert_allclose(out_nhwc, np.asarray(ref),
                               rtol=1e-3, atol=1e-3)
    print("KERNEL_OK")
</pallas_src>

<mosaic_0001>
module attributes {stable_mosaic.version = 11 : i64} {
  func.func @basic_block_kernel(%arg0: i32, %arg1: memref<1x18x128xf32, #tpu.memory_space<vmem>>, %arg2: memref<384x128xf32, #tpu.memory_space<vmem>>, %arg3: memref<1x128xf32, #tpu.memory_space<vmem>>, %arg4: memref<1x128xf32, #tpu.memory_space<vmem>>, %arg5: memref<384x128xf32, #tpu.memory_space<vmem>>, %arg6: memref<1x128xf32, #tpu.memory_space<vmem>>, %arg7: memref<1x128xf32, #tpu.memory_space<vmem>>, %arg8: memref<1x16x128xf32, #tpu.memory_space<vmem>>) attributes {dimension_semantics = [#tpu.dimension_semantics<parallel>], iteration_bounds = array<i64: 2>, scalar_prefetch = 0 : i64, scratch_operands = 0 : i64, tpu.core_type = #tpu.core_type<tc>, window_params = [{transform_indices = @transform_0, window_bounds = array<i64: 1, 18, 128>}, {pipeline_mode = #tpu.pipeline_mode<synchronous>, transform_indices = @transform_1, window_bounds = array<i64: 384, 128>}, {pipeline_mode = #tpu.pipeline_mode<synchronous>, transform_indices = @transform_2, window_bounds = array<i64: 1, 128>}, {pipeline_mode = #tpu.pipeline_mode<synchronous>, transform_indices = @transform_3, window_bounds = array<i64: 1, 128>}, {pipeline_mode = #tpu.pipeline_mode<synchronous>, transform_indices = @transform_4, window_bounds = array<i64: 384, 128>}, {pipeline_mode = #tpu.pipeline_mode<synchronous>, transform_indices = @transform_5, window_bounds = array<i64: 1, 128>}, {pipeline_mode = #tpu.pipeline_mode<synchronous>, transform_indices = @transform_6, window_bounds = array<i64: 1, 128>}, {transform_indices = @transform_7, window_bounds = array<i64: 1, 16, 128>}]} {
    %c0 = arith.constant 0 : index
    %c0_0 = arith.constant 0 : index
    %c0_1 = arith.constant 0 : index
    %0 = vector.load %arg1[%c0, %c0_0, %c0_1] : memref<1x18x128xf32, #tpu.memory_space<vmem>>, vector<1x18x128xf32>
    %1 = vector.shape_cast %0 : vector<1x18x128xf32> to vector<18x128xf32>
    %2 = vector.extract_strided_slice %1 {offsets = [0, 0], sizes = [16, 128], strides = [1, 1]} : vector<18x128xf32> to vector<16x128xf32>
    %3 = vector.extract_strided_slice %1 {offsets = [1, 0], sizes = [16, 128], strides = [1, 1]} : vector<18x128xf32> to vector<16x128xf32>
    %4 = vector.extract_strided_slice %1 {offsets = [2, 0], sizes = [16, 128], strides = [1, 1]} : vector<18x128xf32> to vector<16x128xf32>
    %5 = tpu.concatenate %2, %3, %4 in 1 : vector<16x128xf32>, vector<16x128xf32>, vector<16x128xf32> -> vector<16x384xf32>
    %c0_2 = arith.constant 0 : index
    %c0_3 = arith.constant 0 : index
    %6 = vector.load %arg2[%c0_2, %c0_3] : memref<384x128xf32, #tpu.memory_space<vmem>>, vector<384x128xf32>
    %cst = arith.constant dense<0.000000e+00> : vector<16x128xf32>
    %7 = tpu.matmul %5, %6, %cst {dimension_numbers = #tpu.dot_dimension_numbers<[1], [0], [0], [1], [0, 0, 1, 1], [], []>} : vector<16x384xf32>, vector<384x128xf32>, vector<16x128xf32> -> vector<16x128xf32>
    %c0_4 = arith.constant 0 : index
    %c0_5 = arith.constant 0 : index
    %8 = vector.load %arg3[%c0_4, %c0_5] : memref<1x128xf32, #tpu.memory_space<vmem>>, vector<1x128xf32>
    %9 = vector.broadcast %8 : vector<1x128xf32> to vector<16x128xf32>
    %10 = arith.mulf %7, %9 : vector<16x128xf32>
    %c0_6 = arith.constant 0 : index
    %c0_7 = arith.constant 0 : index
    %11 = vector.load %arg4[%c0_6, %c0_7] : memref<1x128xf32, #tpu.memory_space<vmem>>, vector<1x128xf32>
    %12 = vector.broadcast %11 : vector<1x128xf32> to vector<16x128xf32>
    %13 = arith.addf %10, %12 : vector<16x128xf32>
    %cst_8 = arith.constant 0.000000e+00 : f32
    %14 = vector.broadcast %cst_8 : f32 to vector<16x128xf32>
    %15 = arith.maximumf %13, %14 : vector<16x128xf32>
    %cst_9 = arith.constant 0.000000e+00 : f32
    %16 = vector.broadcast %cst_9 : f32 to vector<1x128xf32>
    %17 = vector.extract_strided_slice %15 {offsets = [0, 0], sizes = [15, 128], strides = [1, 1]} : vector<16x128xf32> to vector<15x128xf32>
    %18 = tpu.concatenate %16, %17 in 0 : vector<1x128xf32>, vector<15x128xf32> -> vector<16x128xf32>
    %19 = vector.extract_strided_slice %15 {offsets = [1, 0], sizes = [15, 128], strides = [1, 1]} : vector<16x128xf32> to vector<15x128xf32>
    %20 = tpu.concatenate %19, %16 in 0 : vector<15x128xf32>, vector<1x128xf32> -> vector<16x128xf32>
    %21 = tpu.concatenate %18, %15, %20 in 1 : vector<16x128xf32>, vector<16x128xf32>, vector<16x128xf32> -> vector<16x384xf32>
    %c0_10 = arith.constant 0 : index
    %c0_11 = arith.constant 0 : index
    %22 = vector.load %arg5[%c0_10, %c0_11] : memref<384x128xf32, #tpu.memory_space<vmem>>, vector<384x128xf32>
    %cst_12 = arith.constant dense<0.000000e+00> : vector<16x128xf32>
    %23 = tpu.matmul %21, %22, %cst_12 {dimension_numbers = #tpu.dot_dimension_numbers<[1], [0], [0], [1], [0, 0, 1, 1], [], []>} : vector<16x384xf32>, vector<384x128xf32>, vector<16x128xf32> -> vector<16x128xf32>
    %c0_13 = arith.constant 0 : index
    %c0_14 = arith.constant 0 : index
    %24 = vector.load %arg6[%c0_13, %c0_14] : memref<1x128xf32, #tpu.memory_space<vmem>>, vector<1x128xf32>
    %25 = vector.broadcast %24 : vector<1x128xf32> to vector<16x128xf32>
    %26 = arith.mulf %23, %25 : vector<16x128xf32>
    %c0_15 = arith.constant 0 : index
    %c0_16 = arith.constant 0 : index
    %27 = vector.load %arg7[%c0_15, %c0_16] : memref<1x128xf32, #tpu.memory_space<vmem>>, vector<1x128xf32>
    %28 = vector.broadcast %27 : vector<1x128xf32> to vector<16x128xf32>
    %29 = arith.addf %26, %28 : vector<16x128xf32>
    %30 = vector.extract_strided_slice %1 {offsets = [1, 0], sizes = [16, 128], strides = [1, 1]} : vector<18x128xf32> to vector<16x128xf32>
    %31 = arith.addf %29, %30 : vector<16x128xf32>
    %cst_17 = arith.constant 0.000000e+00 : f32
    %32 = vector.broadcast %cst_17 : f32 to vector<16x128xf32>
    %33 = arith.maximumf %31, %32 : vector<16x128xf32>
    %c0_18 = arith.constant 0 : index
    %c0_19 = arith.constant 0 : index
    %c0_20 = arith.constant 0 : index
    %34 = vector.load %arg8[%c0_18, %c0_19, %c0_20] : memref<1x16x128xf32, #tpu.memory_space<vmem>>, vector<1x16x128xf32>
    %35 = vector.shape_cast %34 : vector<1x16x128xf32> to vector<16x128xf32>
    %36 = vector.shape_cast %33 : vector<16x128xf32> to vector<1x16x128xf32>
    tpu.vector_store %arg8[%c0_18, %c0_19, %c0_20], %36 {strides = array<i32>} : memref<1x16x128xf32, #tpu.memory_space<vmem>>, vector<1x16x128xf32>,
    return
  }
  func.func @transform_0(%arg0: i32) -> (i32, i32, i32) {
    %c0_i32 = arith.constant 0 : i32
    %c0_i32_0 = arith.constant 0 : i32
    %c0_i32_1 = arith.constant 0 : i32
    return %arg0, %c0_i32, %c0_i32_0 : i32, i32, i32
  }
  func.func @transform_1(%arg0: i32) -> (i32, i32) {
    %c0_i32 = arith.constant 0 : i32
    %c0_i32_0 = arith.constant 0 : i32
    %c0_i32_1 = arith.constant 0 : i32
    return %c0_i32, %c0_i32_0 : i32, i32
  }
  func.func @transform_2(%arg0: i32) -> (i32, i32) {
    %c0_i32 = arith.constant 0 : i32
    %c0_i32_0 = arith.constant 0 : i32
    %c0_i32_1 = arith.constant 0 : i32
    return %c0_i32, %c0_i32_0 : i32, i32
  }
  func.func @transform_3(%arg0: i32) -> (i32, i32) {
    %c0_i32 = arith.constant 0 : i32
    %c0_i32_0 = arith.constant 0 : i32
    %c0_i32_1 = arith.constant 0 : i32
    return %c0_i32, %c0_i32_0 : i32, i32
  }
  func.func @transform_4(%arg0: i32) -> (i32, i32) {
    %c0_i32 = arith.constant 0 : i32
    %c0_i32_0 = arith.constant 0 : i32
    %c0_i32_1 = arith.constant 0 : i32
    return %c0_i32, %c0_i32_0 : i32, i32
  }
  func.func @transform_5(%arg0: i32) -> (i32, i32) {
    %c0_i32 = arith.constant 0 : i32
    %c0_i32_0 = arith.constant 0 : i32
    %c0_i32_1 = arith.constant 0 : i32
    return %c0_i32, %c0_i32_0 : i32, i32
  }
  func.func @transform_6(%arg0: i32) -> (i32, i32) {
    %c0_i32 = arith.constant 0 : i32
    %c0_i32_0 = arith.constant 0 : i32
    %c0_i32_1 = arith.constant 0 : i32
    return %c0_i32, %c0_i32_0 : i32, i32
  }
  func.func @transform_7(%arg0: i32) -> (i32, i32, i32) {
    %c0_i32 = arith.constant 0 : i32
    %c0_i32_0 = arith.constant 0 : i32
    %c0_i32_1 = arith.constant 0 : i32
    return %arg0, %c0_i32, %c0_i32_0 : i32, i32, i32
  }
}

</mosaic_0001>

<bundles_post_ra>
// kernel: basic_block_forward.1
= control target key start
LH: loop header
LB: loop body
LE: loop exit
PB: predicated region body
PF: predicated region fallthrough
CT: control target
= control target key end

     0   :  { %12 = vsyncpa [#allocation3], 0  ;;  %s1493_s0 = inlined_call_operand.vmem [shape: f32[2,18,128], index: 0, kind: input, shape index: {}]   ;;  %s1494_s1 = inlined_call_operand.hbm [shape: f32[384,128], index: 1, kind: input, shape index: {}]   ;;  %s1495_s2 = inlined_call_operand.vmem [shape: f32[1,128], index: 2, kind: input, shape index: {}]   ;;  %s1496_s3 = inlined_call_operand.vmem [shape: f32[1,128], index: 3, kind: input, shape index: {}]   ;;  %s1497_s4 = inlined_call_operand.hbm [shape: f32[384,128], index: 4, kind: input, shape index: {}]   ;;  %s1498_s5 = inlined_call_operand.vmem [shape: f32[1,128], index: 5, kind: input, shape index: {}]   ;;  %s1499_s6 = inlined_call_operand.vmem [shape: f32[1,128], index: 6, kind: input, shape index: {}]   ;;  %s1500_s7 = inlined_call_operand.hbm [shape: f32[2,16,128], index: 7, kind: output, shape index: {}]  }
   0x1   :  { %13 = vsyncpa [#allocation6], 0 }
   0x2   :  { %14 = vsyncpa [#allocation4], 0 }
   0x3   :  { %16 = vsyncpa [#allocation4 + $0x1], 0  ;;  %s1321_s24 = smov 0   ;;  %s1323_s25 = smov 0  }
   0x4   :  { %s1325_s26 = smov 0   ;;  %s1327_s27 = smov 0  }
   0x5 LB: > { %s1342_s28 = sadd.s32 4294967295, %s1272_s27   ;;  %s882_s29 = sadd.s32 4294967294, %s1272_s27   ;;  %s1272_s27 = sphi %s1327_s27, %s1514_s27   ;;  %s1268_s26 = sphi %s1325_s26, %s1513_s26   ;;  %s1264_s25 = sphi %s1323_s25, %s1512_s25   ;;  %s1260_s24 = sphi %s1321_s24, %s1511_s24  }
   0x6   : > { %s1346_s30 = sadd.s32 1, %s1272_s27   ;;  %s181_s8 = sadd.s32 1, %s1268_s26 }
   0x7   : > { %s178_s9 = ssub.s32 %s1272_s27, %s1346_s30  ;;  %p191_p0 = scmp.ne.s32.totalorder %s1268_s26, %s1264_s25 }
   0x8   : > { %p179_p1 = scmp.eq.s32.totalorder %s178_s9, 0  ;;  %p192_p2 = scmp.eq.s32.totalorder %s1342_s28, 1 }
   0x9   : > { %p197_p3 = scmp.ne.s32.totalorder %s1264_s25, %s1260_s24  ;;  %p198_p4 = scmp.eq.s32.totalorder %s882_s29, 1 }
   0xa   : > { %s1357_s10 = scalar_select %p179_p1, %s1268_s26, %s181_s8  }
   0xb   : > { %p1359_p5 = por %p192_p2, %p191_p0  ;;  %p1363_p6 = por %p198_p4, %p197_p3 }
   0xc   : > { %p883_p7 = scmp.ge.s32.totalorder %s1272_s27, 1  ;;  %p205_p8 = scmp.lt.s32.totalorder %s1272_s27, 3 }
   0xd   : > { %s1503_s12 = scalar_select %p1363_p6, 1, 0 }
   0xe   : > { %p1501_p9 = scmp.eq.s32.totalorder %s1342_s28, 0  ;;  %p1370_p10 = pnand %p883_p7, %p205_p8 }
   0xf   : > { %s1274_s14 = smov [#allocation2]   ;;  %s1275_s17 = smov [#allocation5]  }
  0x10   : > { %s217_s15 = sshll.u32 %s1274_s14, 4  ;;  %p1098_p11 = pneg %p1370_p10  ;;  %s218_s15 = int_to_ptr.vmem [resolvable:$true] %s217_s15 }
  0x11   : > { %s236_s18 = sshll.u32 %s1275_s17, 4  ;;  %s1163_s19 = scalar_lea.vmem %s218_s15, 6144  ;;  %s237_s18 = int_to_ptr.vmem [resolvable:$true] %s236_s18 }
  0x12   : > { %p1378_p12 = pnand %p1501_p9, %p1098_p11  ;;  %p1164_p0 = scmp.ne.s32.totalorder %s218_s15, %s1163_s19 }
  0x13   : > { %p1171_p3 = scmp.lt.s32.totalorder %s218_s15, %s218_s15  ;;  %p1172_p4 = scmp.lt.s32.totalorder %s1163_s19, %s1163_s19 }
  0x14   : > { %p1154_p13 = pneg %p1378_p12 }
  0x15   : > { %p1173_p7 = por %p1172_p4, %p1171_p3 }
  0x16   : > { %p1166_p1 = pnand %p1164_p0, %p1154_p13 }
  0x18   : > { %p1167_p2 = pneg %p1166_p1 }
  0x1a   : > { %p1174_p8 = pnand %p1173_p7, %p1167_p2 }
  0x1c   : > { %1177 = shalt.err (!%p1174_p8)
}
  0x1d   : > { %s1276_s20 = smov 128   ;;  %s1277_s21 = smov 8  }
  0x1e   : > { %1101 = dma.hbm_to_vmem [thread:$0]  (!%p1378_p12), %s1494_s1, 6144, %s218_s15, [#allocation3], %s1276_s20, %s1276_s20, %s1277_s21  }
  0x1f   : > { %s1189_s29 = scalar_lea.vmem %s237_s18, 6144  ;;  %p1197_p9 = scmp.lt.s32.totalorder %s237_s18, %s237_s18 }
  0x20   : > { %p1190_p11 = scmp.ne.s32.totalorder %s237_s18, %s1189_s29  ;;  %p1198_p6 = scmp.lt.s32.totalorder %s1189_s29, %s1189_s29 }
  0x22   : > { %p1192_p0 = pnand %p1190_p11, %p1154_p13  ;;  %p1199_p3 = por %p1198_p6, %p1197_p9 }
  0x24   : > { %p1193_p1 = pneg %p1192_p0 }
  0x26   : > { %p1200_p2 = pnand %p1199_p3, %p1193_p1 }
  0x28   : > { %1203 = shalt.err (!%p1200_p2)
}
  0x29   : > { %1104 = dma.hbm_to_vmem [thread:$0]  (!%p1378_p12), %s1497_s4, 6144, %s237_s18, [#allocation6], %s1276_s20, %s1276_s20, %s1277_s21  }
  0x2a   : > { %266 = sbr.rel (%p1370_p10) target bundleno = 518 (0x206), region = 48  ;;  %p1506_p4 = scmp.eq.s32.totalorder (!%p1370_p10), %s1342_s28, 0 }
  0x2f   : > { %1247 = dma.done.wait (%p1506_p4), [#allocation3], 6144   ;;  %p1507_p13 = pmov %p1506_p4 }
  0x30   : > { %p1508_p7 = pmov %p1506_p4 }
  0x31   : > { %1249 = vsyncadd (%p1507_p13), [#allocation3], 4294961152 }
  0x32   : > { %1251 = dma.done.wait (%p1508_p7), [#allocation6], 6144   ;;  %p1509_p6 = pmov %p1506_p4 }
  0x33   : > { %v360_v0 = vld [vmem:[#allocation2 + $0xf8] sm:$0xff]  ;;  %v359_v3 = vld [vmem:[#allocation2 + $0xf0] sm:$0xff]  ;;  %v358_v6 = vld [vmem:[#allocation2 + $0xe8] sm:$0xff]  ;;  %p302_p9 = scmp.lt.s32.totalorder %s1342_s28, 1  ;;  %vm313_vm0 = vcmask 1046528   ;;  %vm321_vm1 = vcmask 1045504  }
  0x34   : > { %1253 = vsyncadd (%p1509_p6), [#allocation6], 4294961152  ;;  %v344_v1 = vld [vmem:[#allocation2 + $0x78] sm:$0xff]  ;;  %905 = vmatprep.subr.mxu0 %v360_v0  ;;  %v343_v4 = vld [vmem:[#allocation2 + $0x70] sm:$0xff]  ;;  %vm549_vm2 = vcmask 1040384   ;;  %s299_s22 = sand.u32 1, %s1264_s25  }
  0x35   : > { %v376_v2 = vld [vmem:[#allocation2 + $0x178] sm:$0xff]  ;;  %v375_v5 = vld [vmem:[#allocation2 + $0x170] sm:$0xff]  ;;  %906 = vmatpush3.msra.mxu0 %v344_v1  ;;  %v374_v7 = vld [vmem:[#allocation2 + $0x168] sm:$0xff]  ;;  %s1414_s13 = scalar_select %p302_p9, %s1342_s28, 1 }
  0x36   : > { %1017 = vmatprep.subr.mxu1 %v376_v2  ;;  %907 = vmatprep.subr.mxu0 %v359_v3  ;;  %v342_v8 = vld [vmem:[#allocation2 + $0x68] sm:$0xff]  ;;  %v357_v9 = vld [vmem:[#allocation2 + $0xe0] sm:$0xff]  ;;  %v356_v12 = vld [vmem:[#allocation2 + $0xd8] sm:$0xff]  ;;  %s890_s23 = sshll.u32 %s299_s22, 4  ;;  %s1278_s21 = smov [#allocation7]  }
  0x37   : > { %1018 = vmatpush3.msra.mxu1 %v376_v2  ;;  %908 = vmatpush3.msra.mxu0 %v343_v4  ;;  %v373_v10 = vld [vmem:[#allocation2 + $0x160] sm:$0xff]  ;;  %v372_v13 = vld [vmem:[#allocation2 + $0x158] sm:$0xff]  ;;  %v355_v15 = vld [vmem:[#allocation2 + $0xd0] sm:$0xff]  ;;  %s1087_s14 = smul.u32 24, %s1414_s13  ;;  %s301_s15 = scalar_lea.vmem [#allocation7], %s890_s23 }
  0x38   : > { %1019 = vmatprep.subr.mxu1 %v375_v5  ;;  %909 = vmatprep.subr.mxu0 %v358_v6  ;;  %v341_v11 = vld [vmem:[#allocation2 + $0x60] sm:$0xff]  ;;  %v340_v14 = vld [vmem:[#allocation2 + $0x58] sm:$0xff]  ;;  %v371_v16 = vld [vmem:[#allocation2 + $0x150] sm:$0xff]  ;;  %s798_s16 = sshll.u32 %s301_s15, 4  ;;  %s1208_s23 = sshll.u32 %s1278_s21, 4  ;;  %s1451_s16 = int_to_ptr.vmem [resolvable:$true] %s798_s16  ;;  %s1209_s23 = int_to_ptr.vmem [resolvable:$false] %s1208_s23 }
  0x39   : > { %1020 = vmatpush3.msra.mxu1 %v375_v5  ;;  %910 = vmatpush3.msra.mxu0 %v342_v8  ;;  %v339_v17 = vld [vmem:[#allocation2 + $0x50] sm:$0xff]  ;;  %v354_v18 = vld [vmem:[#allocation2 + $0xc8] sm:$0xff]  ;;  %v353_v21 = vld [vmem:[#allocation2 + $0xc0] sm:$0xff]  ;;  %s306_s17 = scalar_lea.vmem %s1493_s0, %s1087_s14  ;;  %s904_s14 = sshll.u32 %s1342_s28, 8 }
  0x3a   : > { %1021 = vmatprep.subr.mxu1 %v374_v7  ;;  %911 = vmatprep.subr.mxu0 %v357_v9  ;;  %v370_v19 = vld [vmem:[#allocation2 + $0x148] sm:$0xff]  ;;  %v369_v22 = vld [vmem:[#allocation2 + $0x140] sm:$0xff]  ;;  %v352_v24 = vld [vmem:[#allocation2 + $0xb8] sm:$0xff]  ;;  %s1449_s19 = scalar_lea.hbm %s1500_s7, %s904_s14  ;;  %s1453_s28 = scalar_lea.sflag [#allocation4], %s299_s22 }
  0x3b   : > { %1022 = vmatpush3.msra.mxu1 %v374_v7  ;;  %912 = vmatpush3.msra.mxu0 %v341_v11  ;;  %v338_v20 = vld [vmem:[#allocation2 + $0x48] sm:$0xff]  ;;  %v337_v23 = vld [vmem:[#allocation2 + $0x40] sm:$0xff]  ;;  %v368_v25 = vld [vmem:[#allocation2 + $0x138] sm:$0xff]  ;;  %s1204_s20 = scalar_lea.vmem %s1451_s16, 256  ;;  %s1210_s29 = scalar_lea.vmem %s1209_s23, 512 }
  0x3c   : > { %1023 = vmatprep.subr.mxu1 %v373_v10  ;;  %913 = vmatprep.subr.mxu0 %v356_v12  ;;  %v336_v26 = vld [vmem:[#allocation2 + $0x38] sm:$0xff]  ;;  %v351_v27 = vld [vmem:[#allocation2 + $0xb0] sm:$0xff]  ;;  %v350_v30 = vld [vmem:[#allocation2 + $0xa8] sm:$0xff]  ;;  %p1205_p10 = scmp.ne.s32.totalorder %s1451_s16, %s1204_s20  ;;  %p1211_p11 = scmp.lt.s32.totalorder %s1451_s16, %s1209_s23 }
  0x3d   : > { %1024 = vmatpush3.msra.mxu1 %v373_v10  ;;  %914 = vmatpush3.msra.mxu0 %v340_v14  ;;  %v367_v28 = vld [vmem:[#allocation2 + $0x130] sm:$0xff]  ;;  %v366_v31 = vld [vmem:[#allocation2 + $0x128] sm:$0xff]  ;;  %v349_v33 = vld [vmem:[#allocation2 + $0xa0] sm:$0xff]  ;;  %p1212_p0 = scmp.lt.s32.totalorder %s1210_s29, %s1204_s20 }
  0x3e   : > { %1025 = vmatprep.subr.mxu1 %v372_v13  ;;  %915 = vmatprep.subr.mxu0 %v355_v15  ;;  %v335_v29 = vld [vmem:[#allocation2 + $0x30] sm:$0xff]  ;;  %v334_v32 = vld [vmem:[#allocation2 + $0x28] sm:$0xff]  ;;  %v365_v34 = vld [vmem:[#allocation2 + $0x120] sm:$0xff]  ;;  %p1206_p12 = pnand %p1205_p10, %p1359_p5 }
  0x3f   : > { %1026 = vmatpush3.msra.mxu1 %v372_v13  ;;  %916 = vmatpush3.msra.mxu0 %v339_v17  ;;  %v333_v35 = vld [vmem:[#allocation2 + $0x20] sm:$0xff]  ;;  %v308_v37 = vld [vmem:[%s306_s17 + $0x8] sm:$0xff]  ;;  %v348_v38 = vld [vmem:[#allocation2 + $0x98] sm:$0xff]  ;;  %p1213_p1 = por %p1212_p0, %p1211_p11 }
  0x40   : > { %1027 = vmatprep.subr.mxu1 %v371_v16  ;;  %917 = vmatprep.subr.mxu0 %v354_v18  ;;  %v307_v36 = vld [vmem:[%s306_s17] sm:$0xff]  ;;  %v364_v39 = vld [vmem:[#allocation2 + $0x118] sm:$0xff]  ;;  %v347_v41 = vld [vmem:[#allocation2 + $0x90] sm:$0xff]  ;;  %v315_v44 = vrot.slane %v308_v37, 1  ;;  %v323_v51 = vrot.slane %v308_v37, 2  ;;  %p1207_p8 = pneg %p1206_p12 }
  0x41   : > { %1028 = vmatpush3.msra.mxu1 %v371_v16  ;;  %918 = vmatpush3.msra.mxu0 %v338_v20  ;;  %v332_v40 = vld [vmem:[#allocation2 + $0x18] sm:$0xff]  ;;  %v363_v42 = vld [vmem:[#allocation2 + $0x110] sm:$0xff]  ;;  %v314_v43 = vrot.slane %v307_v36, 1  ;;  %v346_v47 = vld [vmem:[#allocation2 + $0x88] sm:$0xff]  ;;  %v322_v50 = vrot.slane %v307_v36, 2 }
  0x42   : > { %1029 = vmatprep.subr.mxu1 %v370_v19  ;;  %919 = vmatprep.subr.mxu0 %v353_v21  ;;  %v331_v45 = vld [vmem:[#allocation2 + $0x10] sm:$0xff]  ;;  %v362_v48 = vld [vmem:[#allocation2 + $0x108] sm:$0xff]  ;;  %v345_v53 = vld [vmem:[#allocation2 + $0x80] sm:$0xff]  ;;  %p1214_p3 = pnand %p1213_p1, %p1207_p8 }
  0x43   : > { %1030 = vmatpush3.msra.mxu1 %v370_v19  ;;  %920 = vmatpush3.msra.mxu0 %v337_v23  ;;  %v309_v46 = vld [vmem:[%s306_s17 + $0x10] sm:$0x3]  ;;  %v330_v49 = vld [vmem:[#allocation2 + $0x8] sm:$0xff]  ;;  %v1421_v54 = vsel %vm313_vm0, %v314_v43, %v315_v44  ;;  %v329_v56 = vld [vmem:[#allocation2] sm:$0xff]  ;;  %v324_v58 = vsel %vm321_vm1, %v322_v50, %v323_v51 }
  0x44   : > { %1031 = vmatprep.subr.mxu1 %v369_v22  ;;  %921 = vmatprep.subr.mxu0 %v352_v24  ;;  %v317_v52 = vrot.slane %v309_v46, 1  ;;  %v325_v55 = vrot.slane %v309_v46, 2  ;;  %v361_v57 = vld [vmem:[#allocation2 + $0x100] sm:$0xff]  ;;  %v593_v61 = vld [vmem:[#allocation5 + $0xf8] sm:$0xff]  ;;  %v592_v0 = vld [vmem:[#allocation5 + $0xf0] sm:$0xff] }
  0x45   : > { %1032 = vmatpush3.msra.mxu1 %v369_v22  ;;  %922 = vmatpush3.msra.mxu0 %v336_v26  ;;  %v577_v62 = vld [vmem:[#allocation5 + $0x78] sm:$0xff]  ;;  %v576_v1 = vld [vmem:[#allocation5 + $0x70] sm:$0xff]  ;;  %v591_v2 = vld [vmem:[#allocation5 + $0xe8] sm:$0xff] }
  0x46   : > { %1033 = vmatprep.subr.mxu1 %v368_v25  ;;  %923 = vmatprep.subr.mxu0 %v351_v27  ;;  %v1425_v59 = vsel %vm313_vm0, %v315_v44, %v317_v52  ;;  %v326_v60 = vsel %vm321_vm1, %v323_v51, %v325_v55  ;;  %v609_v63 = vld [vmem:[#allocation5 + $0x178] sm:$0xff]  ;;  %v608_v3 = vld [vmem:[#allocation5 + $0x170] sm:$0xff]  ;;  %v575_v4 = vld [vmem:[#allocation5 + $0x68] sm:$0xff] }
  0x47   : > { %1034 = vmatpush3.msra.mxu1 %v368_v25  ;;  %924 = vmatpush3.msra.mxu0 %v335_v29  ;;  %v590_v5 = vld [vmem:[#allocation5 + $0xe0] sm:$0xff]  ;;  %v607_v6 = vld [vmem:[#allocation5 + $0x168] sm:$0xff]  ;;  %v589_v8 = vld [vmem:[#allocation5 + $0xd8] sm:$0xff] }
  0x48   : > { %1035 = vmatprep.subr.mxu1 %v367_v28  ;;  %925 = vmatprep.subr.mxu0 %v350_v30  ;;  %v574_v7 = vld [vmem:[#allocation5 + $0x60] sm:$0xff]  ;;  %v573_v10 = vld [vmem:[#allocation5 + $0x58] sm:$0xff]  ;;  %v588_v11 = vld [vmem:[#allocation5 + $0xd0] sm:$0xff] }
  0x49   : > { %1036 = vmatpush3.msra.mxu1 %v367_v28  ;;  %926 = vmatpush3.msra.mxu0 %v334_v32  ;;  %v606_v9 = vld [vmem:[#allocation5 + $0x160] sm:$0xff]  ;;  %v605_v12 = vld [vmem:[#allocation5 + $0x158] sm:$0xff]  ;;  %v572_v13 = vld [vmem:[#allocation5 + $0x50] sm:$0xff] }
  0x4a   : > { %1037 = vmatprep.subr.mxu1 %v366_v31  ;;  %927 = vmatprep.subr.mxu0 %v349_v33  ;;  %v587_v14 = vld [vmem:[#allocation5 + $0xc8] sm:$0xff]  ;;  %v604_v15 = vld [vmem:[#allocation5 + $0x150] sm:$0xff]  ;;  %v586_v17 = vld [vmem:[#allocation5 + $0xc0] sm:$0xff] }
  0x4b   : > { %1038 = vmatpush3.msra.mxu1 %v366_v31  ;;  %928 = vmatpush3.msra.mxu0 %v333_v35  ;;  %v571_v16 = vld [vmem:[#allocation5 + $0x48] sm:$0xff]  ;;  %v570_v18 = vld [vmem:[#allocation5 + $0x40] sm:$0xff]  ;;  %v585_v19 = vld [vmem:[#allocation5 + $0xb8] sm:$0xff] }
  0x4c   : > { %1039 = vmatprep.subr.mxu1 %v365_v34  ;;  %929 = vmatprep.subr.mxu0 %v348_v38  ;;  %v569_v20 = vld [vmem:[#allocation5 + $0x38] sm:$0xff]  ;;  %v584_v21 = vld [vmem:[#allocation5 + $0xb0] sm:$0xff]  ;;  %v603_v22 = vld [vmem:[#allocation5 + $0x148] sm:$0xff] }
  0x4d   : > { %1040 = vmatpush3.msra.mxu1 %v365_v34  ;;  %930 = vmatpush3.msra.mxu0 %v332_v40  ;;  %v568_v23 = vld [vmem:[#allocation5 + $0x30] sm:$0xff]  ;;  %v583_v24 = vld [vmem:[#allocation5 + $0xa8] sm:$0xff]  ;;  %v602_v25 = vld [vmem:[#allocation5 + $0x140] sm:$0xff] }
  0x4e   : > { %1041 = vmatprep.subr.mxu1 %v364_v39  ;;  %931 = vmatprep.subr.mxu0 %v347_v41  ;;  %v567_v26 = vld [vmem:[#allocation5 + $0x28] sm:$0xff]  ;;  %v582_v27 = vld [vmem:[#allocation5 + $0xa0] sm:$0xff]  ;;  %v601_v28 = vld [vmem:[#allocation5 + $0x138] sm:$0xff] }
  0x4f   : > { %1042 = vmatpush3.msra.mxu1 %v364_v39  ;;  %932 = vmatpush3.msra.mxu0 %v331_v45  ;;  %v566_v29 = vld [vmem:[#allocation5 + $0x20] sm:$0xff]  ;;  %v581_v30 = vld [vmem:[#allocation5 + $0x98] sm:$0xff]  ;;  %v600_v31 = vld [vmem:[#allocation5 + $0x130] sm:$0xff] }
  0x50   : > { %1043 = vmatprep.subr.mxu1 %v363_v42  ;;  %933 = vmatprep.subr.mxu0 %v346_v47  ;;  %v565_v32 = vld [vmem:[#allocation5 + $0x18] sm:$0xff]  ;;  %v580_v33 = vld [vmem:[#allocation5 + $0x90] sm:$0xff]  ;;  %v599_v34 = vld [vmem:[#allocation5 + $0x128] sm:$0xff] }
  0x51   : > { %1044 = vmatpush3.msra.mxu1 %v363_v42  ;;  %934 = vmatpush3.msra.mxu0 %v330_v49  ;;  %v564_v35 = vld [vmem:[#allocation5 + $0x10] sm:$0xff]  ;;  %v563_v38 = vld [vmem:[#allocation5 + $0x8] sm:$0xff]  ;;  %v578_v39 = vld [vmem:[#allocation5 + $0x80] sm:$0xff] }
  0x52   : > { %1045 = vmatprep.subr.mxu1 %v362_v48  ;;  %935 = vmatprep.subr.mxu0 %v345_v53  ;;  %v597_v40 = vld [vmem:[#allocation5 + $0x118] sm:$0xff]  ;;  %v562_v41 = vld [vmem:[#allocation5] sm:$0xff]  ;;  %v596_v42 = vld [vmem:[#allocation5 + $0x110] sm:$0xff] }
  0x53   : > { %1046 = vmatpush3.msra.mxu1 %v362_v48  ;;  %441 = vmatprep.mubr.f32.mxu0 %v1421_v54  ;;  %v595_v43 = vld [vmem:[#allocation5 + $0x108] sm:$0xff]  ;;  %v594_v44 = vld [vmem:[#allocation5 + $0x100] sm:$0xff]  ;;  %vm894_vm3 = vmneg %vm549_vm2 }
  0x54   : > { %936 = vmatpush3.msra.mxu0 %v329_v56  ;;  %1047 = vmatprep.subr.mxu1 %v361_v57  ;;  %v892_v50 = vld [vmem:[%s1495_s2] ss:$0 sm:$0xff] }
  0x55   : > { %442 = vmatmul.mubr.f32.vlgmr.msra.gmra.mxu0 %v307_v36  ;;  %1048 = vmatpush3.msra.mxu1 %v361_v57  ;;  %v579_v36 = vld [vmem:[#allocation5 + $0x88] sm:$0xff]  ;;  %v893_v55 = vld [vmem:[%s1496_s3] ss:$0 sm:$0xff] }
  0x56   : > { %1049 = vmatprep.mubr.f32.mxu1 %v324_v58  ;;  %446 = vmatprep.mubr.f32.mxu0 %v1425_v59 }
  0x57   : > { %1050 = vmatmul.mubr.f32.vlgmr.msra.gmra.mxu1 %v326_v60  ;;  %961 = vmatprep.subr.mxu0 %v593_v61 }
  0x58   : > { %962 = vmatpush3.msra.mxu0 %v577_v62  ;;  %1052 = vmatprep.subr.mxu1 %v609_v63 }
  0x59   : > { %447 = vmatmul.mubr.f32.gmra.mxu0 %v308_v37  ;;  %963 = vmatprep.subr.mxu0 %v592_v0  ;;  %v598_v37 = vld [vmem:[#allocation5 + $0x120] sm:$0xff] }
  0x5a   : > { %964 = vmatpush3.msra.mxu0 %v576_v1  ;;  %1053 = vmatpush3.msra.mxu1 %v609_v63 }
  0x5b   : > { %965 = vmatprep.subr.mxu0 %v591_v2  ;;  %1054 = vmatprep.subr.mxu1 %v608_v3 }
  0x5c   : > { %966 = vmatpush3.msra.mxu0 %v575_v4  ;;  %1055 = vmatpush3.msra.mxu1 %v608_v3 }
  0x5d   : > { %967 = vmatprep.subr.mxu0 %v590_v5  ;;  %1056 = vmatprep.subr.mxu1 %v607_v6 }
  0x5e   : > { %968 = vmatpush3.msra.mxu0 %v574_v7  ;;  %1057 = vmatpush3.msra.mxu1 %v607_v6 }
  0x5f   : > { %969 = vmatprep.subr.mxu0 %v589_v8  ;;  %1058 = vmatprep.subr.mxu1 %v606_v9 }
  0x60   : > { %970 = vmatpush3.msra.mxu0 %v573_v10  ;;  %1059 = vmatpush3.msra.mxu1 %v606_v9 }
  0x61   : > { %971 = vmatprep.subr.mxu0 %v588_v11  ;;  %1060 = vmatprep.subr.mxu1 %v605_v12 }
  0x62   : > { %972 = vmatpush3.msra.mxu0 %v572_v13  ;;  %1061 = vmatpush3.msra.mxu1 %v605_v12 }
  0x63   : > { %973 = vmatprep.subr.mxu0 %v587_v14  ;;  %1062 = vmatprep.subr.mxu1 %v604_v15 }
  0x64   : > { %974 = vmatpush3.msra.mxu0 %v571_v16  ;;  %1063 = vmatpush3.msra.mxu1 %v604_v15  ;;  %v897_v15 = vld [vmem:[%s1498_s5] ss:$0 sm:$0xff] }
  0x65   : > { %975 = vmatprep.subr.mxu0 %v586_v17  ;;  %1064 = vmatprep.subr.mxu1 %v603_v22 }
  0x66   : > { %976 = vmatpush3.msra.mxu0 %v570_v18  ;;  %1065 = vmatpush3.msra.mxu1 %v603_v22  ;;  %v898_v18 = vld [vmem:[%s1499_s6] ss:$0 sm:$0xff] }
  0x67   : > { %977 = vmatprep.subr.mxu0 %v585_v19  ;;  %1066 = vmatprep.subr.mxu1 %v602_v25 }
  0x68   : > { %978 = vmatpush3.msra.mxu0 %v569_v20  ;;  %1067 = vmatpush3.msra.mxu1 %v602_v25 }
  0x69   : > { %979 = vmatprep.subr.mxu0 %v584_v21  ;;  %1068 = vmatprep.subr.mxu1 %v601_v28 }
  0x6a   : > { %980 = vmatpush3.msra.mxu0 %v568_v23  ;;  %1069 = vmatpush3.msra.mxu1 %v601_v28 }
  0x6b   : > { %981 = vmatprep.subr.mxu0 %v583_v24  ;;  %1070 = vmatprep.subr.mxu1 %v600_v31 }
  0x6c   : > { %982 = vmatpush3.msra.mxu0 %v567_v26  ;;  %1071 = vmatpush3.msra.mxu1 %v600_v31 }
  0x6d   : > { %983 = vmatprep.subr.mxu0 %v582_v27  ;;  %1072 = vmatprep.subr.mxu1 %v599_v34 }
  0x6e   : > { %984 = vmatpush3.msra.mxu0 %v566_v29  ;;  %1073 = vmatpush3.msra.mxu1 %v599_v34 }
  0x6f   : > { %985 = vmatprep.subr.mxu0 %v581_v30  ;;  %1074 = vmatprep.subr.mxu1 %v598_v37 }
  0x70   : > { %986 = vmatpush3.msra.mxu0 %v565_v32  ;;  %1075 = vmatpush3.msra.mxu1 %v598_v37 }
  0x71   : > { %987 = vmatprep.subr.mxu0 %v580_v33  ;;  %1076 = vmatprep.subr.mxu1 %v597_v40 }
  0x72   : > { %988 = vmatpush3.msra.mxu0 %v564_v35  ;;  %1077 = vmatpush3.msra.mxu1 %v597_v40 }
  0x73   : > { %989 = vmatprep.subr.mxu0 %v579_v36  ;;  %1078 = vmatprep.subr.mxu1 %v596_v42 }
  0x74   : > { %990 = vmatpush3.msra.mxu0 %v563_v38  ;;  %1079 = vmatpush3.msra.mxu1 %v596_v42 }
  0x75   : > { %991 = vmatprep.subr.mxu0 %v578_v39  ;;  %1080 = vmatprep.subr.mxu1 %v595_v43 }
  0x76   : > { %992 = vmatpush3.msra.mxu0 %v562_v41  ;;  %1081 = vmatpush3.msra.mxu1 %v595_v43 }
  0x77   : > { %1082 = vmatprep.subr.mxu1 %v594_v44 }
  0x78   : > { %1083 = vmatpush3.msra.mxu1 %v594_v44 }
 0x115   : > { %v937_v45 = vpop.f32.mrf.mxu0 }
 0x117   : > { %v1051_v46 = vpop.f32.mrf.mxu1  ;;  %v938_v47 = vpop.f32.mrf.mxu0 }
 0x118   : > { %v939_v48 = vadd.f32 %v938_v47, %v937_v45 }
 0x119   : > { %v518_v49 = vpop.f32.mrf.mxu1  ;;  %v940_v51 = vpop.f32.mrf.mxu0 }
 0x11a   : > { %v519_v52 = vadd.f32 %v939_v48, %v518_v49 }
 0x11b   : > { %v941_v53 = vpop.f32.mrf.mxu0 }
 0x11c   : > { %v534_v56 = vmul.f32 %v892_v50, %v519_v52  ;;  %v942_v57 = vadd.f32 %v941_v53, %v940_v51 }
 0x11e   : > { %v524_v58 = vadd.f32 %v1051_v46, %v942_v57  ;;  %v543_v60 = vadd.f32 %v893_v55, %v534_v56 }
 0x120   : > { %v535_v61 = vmul.f32 %v892_v50, %v524_v58  ;;  %v545_v62 = vmax.f32 %v543_v60, 0.0 }
 0x122   : > { %v550_v63 = vrot.slane %v545_v62, 7  ;;  %674 = vmatprep.mubr.f32.mxu0 %v545_v62  ;;  %v544_v0 = vadd.f32 %v893_v55, %v535_v61  ;;  %v556_v3 = vrot.slane %v545_v62, 1 }
 0x124   : > { %895 = vmatmul.mubr.msk.f32.vlgmr.msra.gmra.mxu0 %vm894_vm3, %v550_v63  ;;  %v546_v1 = vmax.f32 %v544_v0, 0.0 }
 0x126   : > { %679 = vmatprep.mubr.f32.mxu0 %v546_v1  ;;  %v551_v2 = vrot.slane %v546_v1, 7  ;;  %v557_v4 = vrot.slane %v546_v1, 1 }
 0x128   : > { %v552_v5 = vsel %vm549_vm2, %v550_v63, %v551_v2  ;;  %v558_v6 = vsel %vm313_vm0, %v556_v3, %v557_v4 }
 0x129   : > { %680 = vmatmul.mubr.f32.gmra.mxu0 %v552_v5  ;;  %1084 = vmatprep.mubr.f32.mxu1 %v558_v6 }
 0x12a   : > { %1085 = vmatmul.mubr.msk.f32.vlgmr.msra.gmra.mxu1 %vm313_vm0, %v557_v4 }
 0x1e4   : > { %v993_v7 = vpop.f32.mrf.mxu0 }
 0x1e6   : > { %v994_v8 = vpop.f32.mrf.mxu0 }
 0x1e7   : > { %v995_v11 = vadd.f32 %v994_v8, %v993_v7 }
 0x1e9   : > { %v996_v9 = vpop.f32.mrf.mxu0 }
 0x1ea   : > { %v1086_v10 = vpop.f32.mrf.mxu1 }
 0x1eb   : > { %v997_v12 = vpop.f32.mrf.mxu0 }
 0x1ec   : > { %v998_v13 = vadd.f32 %v997_v12, %v996_v9  ;;  %v751_v14 = vpop.f32.mrf.mxu1 }
 0x1ed   : > { %v752_v16 = vadd.f32 %v995_v11, %v751_v14 }
 0x1ee   : > { %v757_v17 = vadd.f32 %v1086_v10, %v998_v13 }
 0x1ef   : > { %v767_v19 = vmul.f32 %v897_v15, %v752_v16 }
 0x1f0   : > { %v768_v20 = vmul.f32 %v897_v15, %v757_v17 }
 0x1f1   : > { %v776_v21 = vadd.f32 %v898_v18, %v767_v19 }
 0x1f2   : > { %v777_v22 = vadd.f32 %v898_v18, %v768_v20 }
 0x1f3   : > { %v778_v23 = vadd.f32 %v776_v21, %v1421_v54 }
 0x1f4   : > { %v779_v24 = vadd.f32 %v777_v22, %v1425_v59 }
 0x1f5   : > { %v780_v25 = vmax.f32 %v778_v23, 0.0 }
 0x1f6   : > { %v781_v26 = vmax.f32 %v779_v24, 0.0 }
 0x1f7   : > { %782 = vst [vmem:[%s301_s15] sm:$0xff] %v780_v25 }
 0x1f8   : > { %783 = vst [vmem:[%s301_s15 + $0x8] sm:$0xff] %v781_v26 }
 0x1f9   : > { %1217 = shalt.err (!%p1214_p3)
}
 0x1fa   : > { %s1218_s22 = scalar_lea.hbm %s1449_s19, 256  ;;  %s1222_s13 = scalar_lea.hbm %s1500_s7, 512 }
 0x1fb   : > { %p1219_p2 = scmp.ne.s32.totalorder %s1449_s19, %s1218_s22  ;;  %p1223_p7 = scmp.lt.s32.totalorder %s1449_s19, %s1500_s7 }
 0x1fc   : > { %p1224_p6 = scmp.lt.s32.totalorder %s1222_s13, %s1218_s22 }
 0x1fd   : > { %p1220_p4 = pnand %p1219_p2, %p1359_p5 }
 0x1fe   : > { %p1225_p9 = por %p1224_p6, %p1223_p7 }
 0x1ff   : > { %p1221_p13 = pneg %p1220_p4 }
 0x201   : > { %p1226_p10 = pnand %p1225_p9, %p1221_p13 }
 0x203   : > { %1229 = shalt.err (!%p1226_p10)
}
 0x204   : > { %s1279_s17 = smov 128   ;;  %s1280_s18 = smov 8  }
 0x205   : > { %1096 = dma.vmem_to_hbm [thread:$0]  (%p1359_p5), %s1451_s16, 256, %s1449_s19, %s1453_s28, %s1279_s17, %s1279_s17, %s1280_s18  }
 0x206 PF: > { %p1113_p12 = scmp.ge.s32.totalorder %s1272_s27, 2  ;;  %s813_s20 = sand.u32 1, %s1260_s24  }
 0x207   : > { %p1510_p8 = scmp.ne.s32.totalorder %s1503_s12, 0  ;;  %s814_s21 = scalar_lea.sflag [#allocation4], %s813_s20 }
 0x209   : > { %p1106_p11 = pnand %p1113_p12, %p1510_p8 }
 0x20b   : > { %p1107_p0 = pneg %p1106_p11 }
 0x20d   : > { %1255 = dma.done.wait (%p1107_p0), %s814_s21, 256  }
 0x20e   : > { %1257 = vsyncadd (%p1107_p0), %s814_s21, 4294967040  ;;  %p19_p1 = scmp.ge.s32.totalorder %s1346_s30, 4   ;;  %s1511_s24 = smov %s1264_s25 }
 0x20f   : > { %s1512_s25 = smov %s1268_s26  ;;  %s1513_s26 = smov %s1357_s10 }
 0x210   : > { %s1514_s27 = smov %s1346_s30  ;;  %21 = sbr.rel (!%p19_p1) target bundleno = 5 (0x5), region = 92 }
 0x215   :  { %819 = vsyncpa [#allocation3], 1 }
 0x216   :  { %821 = vsyncpa [#allocation3 + $0x1], 1 }
 0x217   :  { %822 = vsyncpa [#allocation6], 1 }
 0x218   :  { %823 = vsyncpa [#allocation4], 1 }
 0x219   :  { %825 = vsyncpa [#allocation4 + $0x1], 1 }

</bundles_post_ra>
